<compile_context>
chip_gen: v6e
topology: v6e:2x2x1
jax: 0.10.0
libtpu: 0.0.40
codegen_flags: <defaults>
</compile_context>

<pallas_src>
import jax
import jax.numpy as jnp
from jax import lax
from jax.experimental import pallas as pl
from jax.experimental.pallas import tpu as pltpu


# ----------------------------------------------------------------------------
# helpers
# ----------------------------------------------------------------------------
def _round_up(x, m):
    return (x + m - 1) // m * m


def _time_chunk(t, max_chunk=16):
    """Largest divisor of t that is <= max_chunk (so the time grid is exact)."""
    for c in range(min(t, max_chunk), 0, -1):
        if t % c == 0:
            return c
    return 1


def _vmem_limit(tile_bytes):
    """Explicit VMEM budget: double-buffered tiles + slack, clamped to
    [32 MiB, 64 MiB] so it also respects v7x's 64 MiB physical VMEM."""
    return int(min(64 << 20, max(32 << 20, 2 * tile_bytes + (1 << 20))))


# ----------------------------------------------------------------------------
# Shared tiled matmul + bias kernel (used for the hoisted x@W_ih gate
# pre-activations and for the decoder).
# bf16 operands, f32 accumulation, grid parallel over (M, N).
# ----------------------------------------------------------------------------
def _matmul_bias_kernel(x_ref, w_ref, b_ref, o_ref):
    o_ref[...] = (jnp.dot(x_ref[...], w_ref[...],
                          preferred_element_type=jnp.float32)
                  + b_ref[...])


def matmul_bias_pallas(x, w_bf16, bias_f32, *, tm=256, tn=None):
    """x: (M, K) (any float dtype, cast to bf16); w_bf16: (K, N) bf16;
    bias_f32: (N,). Returns (M, N) f32.  N must be a multiple of tn."""
    M, K = x.shape
    N = w_bf16.shape[1]
    tm = min(tm, _round_up(M, 16))
    Mp = _round_up(M, tm)
    if Mp != M:
        x = jnp.pad(x, ((0, Mp - M), (0, 0)))
    if tn is None or tn >= N:
        tn = N
    assert N % tn == 0, (N, tn)
    grid = (Mp // tm, N // tn)
    tile_bytes = tm * K * 2 + K * tn * 2 + tn * 4 + tm * tn * 4

    out = pl.pallas_call(
        _matmul_bias_kernel,
        out_shape=jax.ShapeDtypeStruct((Mp, N), jnp.float32),
        grid_spec=pltpu.PrefetchScalarGridSpec(
            num_scalar_prefetch=0,
            grid=grid,
            in_specs=[
                pl.BlockSpec((tm, K), lambda i, j: (i, 0)),
                pl.BlockSpec((K, tn), lambda i, j: (0, j)),
                pl.BlockSpec((1, tn), lambda i, j: (0, j)),
            ],
            out_specs=pl.BlockSpec((tm, tn), lambda i, j: (i, j)),
        ),
        compiler_params=pltpu.CompilerParams(
            dimension_semantics=("parallel", "parallel"),
            vmem_limit_bytes=_vmem_limit(tile_bytes)),
    )(x.astype(jnp.bfloat16), w_bf16, bias_f32.reshape(1, N))
    return out[:M] if Mp != M else out


# ----------------------------------------------------------------------------
# Recurrent LSTM kernel: only h @ W_hh + pointwise per step.
# Grid over time chunks; TC timesteps unrolled inside each grid step.
# ----------------------------------------------------------------------------
def _lstm_recur_kernel(g_ref, whh_ref, h0_ref, c0_ref,
                       y_ref, hN_ref, cN_ref, h_s, c_s):
    blk = pl.program_id(0)

    @pl.when(blk == 0)
    def _():
        h_s[...] = h0_ref[...]
        c_s[...] = c0_ref[...]

    H = h_s.shape[-1]
    TC = y_ref.shape[0]

    def step(t, carry):
        h = h_s[...]
        c = c_s[...]
        # Input projection + bias were precomputed; only recurrent matmul here.
        gates = g_ref[t] + jnp.dot(h.astype(jnp.bfloat16), whh_ref[...],
                                   preferred_element_type=jnp.float32)
        # PyTorch gate order: i, f, g, o.  (For production nhid, pad H to a
        # multiple of 128 so these slices are lane-aligned.)
        i = jax.nn.sigmoid(gates[:, 0:H])
        f = jax.nn.sigmoid(gates[:, H:2 * H])
        g = jnp.tanh(gates[:, 2 * H:3 * H])
        o = jax.nn.sigmoid(gates[:, 3 * H:4 * H])
        c_new = f * c + i * g
        h_new = o * jnp.tanh(c_new)
        h_s[...] = h_new
        c_s[...] = c_new
        y_ref[t] = h_new.astype(y_ref.dtype)
        return carry

    lax.fori_loop(0, TC, step, 0, unroll=True)

    # Final states only matter on the last grid step; skip redundant stores.
    @pl.when(blk == pl.num_programs(0) - 1)
    def _():
        hN_ref[...] = h_s[...]
        cN_ref[...] = c_s[...]


def lstm_layer_pallas(x, w_ih_t_bf16, w_hh_t_bf16, bias, h0, c0, *,
                      max_chunk=16):
    """x: (T, B, Din); w_ih_t_bf16: (Din, 4H) bf16; w_hh_t_bf16: (H, 4H) bf16;
    bias: (4H,) f32 (b_ih + b_hh folded); h0, c0: (B, H) f32.
    Returns y (T, B, H) bf16, hN (B, H) f32, cN (B, H) f32."""
    T, B, Din = x.shape
    H = h0.shape[-1]

    # 1) Hoisted input projection: one big MXU-efficient matmul for all steps.
    g_all = matmul_bias_pallas(x.reshape(T * B, Din), w_ih_t_bf16, bias)
    g_all = g_all.reshape(T, B, 4 * H)

    # 2) Sequential recurrence over chunked time grid.
    TC = _time_chunk(T, max_chunk)
    tile_bytes = (TC * B * 4 * H * 4          # gate pre-activation block (f32)
                  + H * 4 * H * 2             # W_hh (bf16)
                  + 4 * B * H * 4             # h0/c0 + hN/cN
                  + TC * B * H * 2            # y block (bf16)
                  + 2 * B * H * 4)            # h/c scratch

    return pl.pallas_call(
        _lstm_recur_kernel,
        out_shape=(jax.ShapeDtypeStruct((T, B, H), jnp.bfloat16),
                   jax.ShapeDtypeStruct((B, H), jnp.float32),
                   jax.ShapeDtypeStruct((B, H), jnp.float32)),
        grid_spec=pltpu.PrefetchScalarGridSpec(
            num_scalar_prefetch=0,
            grid=(T // TC,),
            in_specs=[
                pl.BlockSpec((TC, B, 4 * H), lambda i: (i, 0, 0)),
                pl.BlockSpec((H, 4 * H), lambda i: (0, 0)),
                pl.BlockSpec((B, H), lambda i: (0, 0)),
                pl.BlockSpec((B, H), lambda i: (0, 0)),
            ],
            out_specs=[
                pl.BlockSpec((TC, B, H), lambda i: (i, 0, 0)),
                pl.BlockSpec((B, H), lambda i: (0, 0)),
                pl.BlockSpec((B, H), lambda i: (0, 0)),
            ],
            scratch_shapes=[pltpu.VMEM((B, H), jnp.float32),
                            pltpu.VMEM((B, H), jnp.float32)],
        ),
        compiler_params=pltpu.CompilerParams(
            dimension_semantics=("arbitrary",),
            vmem_limit_bytes=_vmem_limit(tile_bytes)),
    )(g_all, w_hh_t_bf16, h0, c0)


# ----------------------------------------------------------------------------
# Model (parameter container + forward)
# ----------------------------------------------------------------------------
class RNNModelFastPallas:
    def __init__(self, ntoken, ninp, nhid, nlayers, pad_idx, key):
        self.ntoken, self.ninp, self.nhid, self.nlayers = ntoken, ninp, nhid, nlayers
        self.pad_idx = pad_idx
        initrange = 0.1
        keys = jax.random.split(key, 2 + 4 * nlayers)

        # Embedding (ntoken+1, ninp), pad row zeroed (matches init_weights).
        enc = jax.random.uniform(keys[0], (ntoken + 1, ninp),
                                 minval=-initrange, maxval=initrange,
                                 dtype=jnp.float32)
        self.enc_w = enc.at[pad_idx].set(0.0)

        # Decoder Linear(nhid, ntoken+1), bias zero, pad row zeroed.
        dec = jax.random.uniform(keys[1], (ntoken + 1, nhid),
                                 minval=-initrange, maxval=initrange,
                                 dtype=jnp.float32)
        dec = dec.at[pad_idx].set(0.0)
        # forward() returns decoded[:, :, :-1]; drop that last output column
        # (weight row `ntoken`) inside the decoder instead of slicing a second
        # full logits array afterwards.
        w_dec_t = dec[:ntoken].T                      # (nhid, ntoken) f32
        b_dec = jnp.zeros((ntoken,), jnp.float32)
        self.dec_w_t = w_dec_t                        # f32 copy for reference
        self.dec_b = b_dec
        # Pad vocab dim once to a lane-dense tile multiple for the tiled decoder.
        self.dec_tn = 512 if ntoken > 512 else 128
        n_pad = _round_up(ntoken, self.dec_tn)
        self.dec_w_t_bf16 = jnp.pad(
            w_dec_t, ((0, 0), (0, n_pad - ntoken))).astype(jnp.bfloat16)
        self.dec_b_pad = jnp.pad(b_dec, (0, n_pad - ntoken))

        # LSTM stack (tie_weights=False -> every layer hidden size = nhid).
        self.lstm_params = []
        for l in range(nlayers):
            din = ninp if l == 0 else nhid
            k = 1.0 / (nhid ** 0.5)
            kw = keys[2 + 4 * l: 2 + 4 * (l + 1)]
            w_ih = jax.random.uniform(kw[0], (4 * nhid, din), minval=-k, maxval=k)
            w_hh = jax.random.uniform(kw[1], (4 * nhid, nhid), minval=-k, maxval=k)
            b_ih = jax.random.uniform(kw[2], (4 * nhid,), minval=-k, maxval=k)
            b_hh = jax.random.uniform(kw[3], (4 * nhid,), minval=-k, maxval=k)
            w_ih_t = w_ih.T.astype(jnp.float32)
            w_hh_t = w_hh.T.astype(jnp.float32)
            bias = (b_ih + b_hh).astype(jnp.float32)   # fold the two LSTM biases
            self.lstm_params.append(dict(
                w_ih_t=w_ih_t, w_hh_t=w_hh_t, bias=bias,
                w_ih_t_bf16=w_ih_t.astype(jnp.bfloat16),
                w_hh_t_bf16=w_hh_t.astype(jnp.bfloat16)))

    def init_hidden(self, bsz):
        return [(jnp.zeros((1, bsz, self.nhid), jnp.float32),
                 jnp.zeros((1, bsz, self.nhid), jnp.float32))
                for _ in range(self.nlayers)]

    def forward(self, tokens, hidden):
        """tokens: (T, B) int32; hidden: list of (h, c) each (1, B, nhid).
        Returns (decoded (T, B, ntoken), new_hidden)."""
        T, B = tokens.shape
        emb = self.enc_w[tokens]            # (T, B, ninp) — glue gather in JAX
        out = emb                           # lockdrop(dropouti): identity (eval)
        new_hidden = []
        for l, p in enumerate(self.lstm_params):
            h0 = hidden[l][0][0]
            c0 = hidden[l][1][0]
            out, hN, cN = lstm_layer_pallas(
                out, p["w_ih_t_bf16"], p["w_hh_t_bf16"], p["bias"], h0, c0)
            new_hidden.append((hN[None], cN[None]))
            # lockdrop(dropouth) between layers: identity in eval mode.
        # lockdrop(dropout) on final output: identity in eval mode.
        h_flat = out.reshape(T * B, self.nhid)
        logits = matmul_bias_pallas(h_flat, self.dec_w_t_bf16, self.dec_b_pad,
                                    tm=256, tn=self.dec_tn)
        decoded = logits[:, :self.ntoken].reshape(T, B, self.ntoken)
        return decoded, new_hidden


# ----------------------------------------------------------------------------
# Pure-JAX reference (same bf16-operand / f32-accumulate arithmetic).
# ----------------------------------------------------------------------------
def _ref_forward(model, tokens, hidden):
    T, B = tokens.shape
    H = model.nhid
    out = model.enc_w[tokens]
    for l, p in enumerate(model.lstm_params):
        Din = out.shape[-1]
        g_all = (jnp.dot(out.reshape(T * B, Din).astype(jnp.bfloat16),
                         p["w_ih_t"].astype(jnp.bfloat16),
                         preferred_element_type=jnp.float32)
                 + p["bias"]).reshape(T, B, 4 * H)
        w_hh_bf16 = p["w_hh_t"].astype(jnp.bfloat16)
        h0 = hidden[l][0][0]
        c0 = hidden[l][1][0]

        def step(carry, g_t):
            h, c = carry
            gates = g_t + jnp.dot(h.astype(jnp.bfloat16), w_hh_bf16,
                                  preferred_element_type=jnp.float32)
            i = jax.nn.sigmoid(gates[:, 0:H])
            f = jax.nn.sigmoid(gates[:, H:2 * H])
            g = jnp.tanh(gates[:, 2 * H:3 * H])
            o = jax.nn.sigmoid(gates[:, 3 * H:4 * H])
            c = f * c + i * g
            h = o * jnp.tanh(c)
            return (h, c), h.astype(jnp.bfloat16)

        (_, _), ys = lax.scan(step, (h0, c0), g_all)
        out = ys
    h_flat = out.reshape(T * B, H)
    dec = (jnp.dot(h_flat.astype(jnp.bfloat16),
                   model.dec_w_t.astype(jnp.bfloat16),
                   preferred_element_type=jnp.float32)
           + model.dec_b)
    return dec.reshape(T, B, model.ntoken)


# ----------------------------------------------------------------------------
if __name__ == "__main__":
    key = jax.random.PRNGKey(0)
    ntoken, ninp, nhid, nlayers = 50, 32, 32, 2
    pad_idx = ntoken        # pad token index = ntoken (embedding has ntoken+1 rows)
    T, B = 8, 8

    k_model, k_tok = jax.random.split(key)
    model = RNNModelFastPallas(ntoken, ninp, nhid, nlayers, pad_idx, k_model)

    tokens = jax.random.randint(k_tok, (T, B), 0, ntoken, dtype=jnp.int32)
    hidden = model.init_hidden(B)

    decoded, new_hidden = model.forward(tokens, hidden)
    decoded = jax.block_until_ready(decoded)
    for h, c in new_hidden:
        jax.block_until_ready(h)
        jax.block_until_ready(c)

    assert decoded.shape == (T, B, ntoken), decoded.shape
    for h, c in new_hidden:
        assert h.shape == (1, B, nhid) and c.shape == (1, B, nhid)

    # Numerical sanity check against pure-JAX reference (same bf16 math).
    ref = _ref_forward(model, tokens, hidden)
    assert jnp.allclose(decoded, ref, rtol=2e-3, atol=2e-3), "mismatch vs reference"

    # TODO(synk): for very large nhid, also pad H to a multiple of 128 so the
    # per-gate slices and y stores are fully lane-aligned.
    print("KERNEL_OK")
</pallas_src>

<mosaic_0001>
module attributes {stable_mosaic.version = 11 : i64} {
  func.func @_matmul_bias_kernel(%arg0: i32, %arg1: i32, %arg2: memref<64x32xbf16, #tpu.memory_space<vmem>>, %arg3: memref<32x128xbf16, #tpu.memory_space<vmem>>, %arg4: memref<1x128xf32, #tpu.memory_space<vmem>>, %arg5: memref<64x128xf32, #tpu.memory_space<vmem>>) attributes {dimension_semantics = [#tpu.dimension_semantics<parallel>, #tpu.dimension_semantics<parallel>], iteration_bounds = array<i64: 1, 1>, scalar_prefetch = 0 : i64, scratch_operands = 0 : i64, tpu.core_type = #tpu.core_type<tc>, window_params = [{transform_indices = @transform_0, window_bounds = array<i64: 64, 32>}, {transform_indices = @transform_1, window_bounds = array<i64: 32, 128>}, {transform_indices = @transform_2, window_bounds = array<i64: 1, 128>}, {transform_indices = @transform_3, window_bounds = array<i64: 64, 128>}]} {
    %c0 = arith.constant 0 : index
    %c0_0 = arith.constant 0 : index
    %0 = vector.load %arg2[%c0, %c0_0] : memref<64x32xbf16, #tpu.memory_space<vmem>>, vector<64x32xbf16>
    %c0_1 = arith.constant 0 : index
    %c0_2 = arith.constant 0 : index
    %1 = vector.load %arg3[%c0_1, %c0_2] : memref<32x128xbf16, #tpu.memory_space<vmem>>, vector<32x128xbf16>
    %cst = arith.constant dense<0.000000e+00> : vector<64x128xf32>
    %2 = tpu.matmul %0, %1, %cst {dimension_numbers = #tpu.dot_dimension_numbers<[1], [0], [0], [1], [0, 0, 1, 1], [], []>} : vector<64x32xbf16>, vector<32x128xbf16>, vector<64x128xf32> -> vector<64x128xf32>
    %c0_3 = arith.constant 0 : index
    %c0_4 = arith.constant 0 : index
    %3 = vector.load %arg4[%c0_3, %c0_4] : memref<1x128xf32, #tpu.memory_space<vmem>>, vector<1x128xf32>
    %4 = vector.broadcast %3 : vector<1x128xf32> to vector<64x128xf32>
    %5 = arith.addf %2, %4 : vector<64x128xf32>
    %c0_5 = arith.constant 0 : index
    %c0_6 = arith.constant 0 : index
    %6 = vector.load %arg5[%c0_5, %c0_6] : memref<64x128xf32, #tpu.memory_space<vmem>>, vector<64x128xf32>
    tpu.vector_store %arg5[%c0_5, %c0_6], %5 {strides = array<i32>} : memref<64x128xf32, #tpu.memory_space<vmem>>, vector<64x128xf32>,
    return
  }
  func.func @transform_0(%arg0: i32, %arg1: i32) -> (i32, i32) {
    %c0_i32 = arith.constant 0 : i32
    %c0_i32_0 = arith.constant 0 : i32
    return %arg0, %c0_i32 : i32, i32
  }
  func.func @transform_1(%arg0: i32, %arg1: i32) -> (i32, i32) {
    %c0_i32 = arith.constant 0 : i32
    %c0_i32_0 = arith.constant 0 : i32
    return %c0_i32, %arg1 : i32, i32
  }
  func.func @transform_2(%arg0: i32, %arg1: i32) -> (i32, i32) {
    %c0_i32 = arith.constant 0 : i32
    %c0_i32_0 = arith.constant 0 : i32
    return %c0_i32, %arg1 : i32, i32
  }
  func.func @transform_3(%arg0: i32, %arg1: i32) -> (i32, i32) {
    %c0_i32 = arith.constant 0 : i32
    return %arg0, %arg1 : i32, i32
  }
}

</mosaic_0001>

<bundles_post_ra>
// kernel: tpu_custom_call.1
= control target key start
LH: loop header
LB: loop body
LE: loop exit
PB: predicated region body
PF: predicated region fallthrough
CT: control target
= control target key end

     0   :  { %vm67_vm0 = vcmask 261120   ;;  %s280_s0 = inlined_call_operand.vmem [shape: bf16[64,32], index: 0, kind: input, shape index: {}]   ;;  %s281_s1 = inlined_call_operand.vmem [shape: bf16[32,128], index: 1, kind: input, shape index: {}]   ;;  %s282_s2 = inlined_call_operand.vmem [shape: f32[1,128], index: 2, kind: input, shape index: {}]   ;;  %s283_s3 = inlined_call_operand.hbm [shape: f32[64,128], index: 3, kind: output, shape index: {}]  }
   0x1   :  { %v205_v0 = vld [vmem:[%s281_s1 + $0x8] sm:$0xff]   ;;  %v206_v1 = vld [vmem:[%s281_s1] sm:$0xff]   ;;  %v208_v3 = vld [vmem:[%s280_s0 + $0x10] sm:$0xff]  }
   0x2   :  { %186 = vmatprep.subr.bf16.mxu0 %v205_v0  ;;  %198 = vmatprep.subr.bf16.mxu1 %v205_v0  ;;  %v207_v2 = vld [vmem:[%s280_s0] sm:$0xff]   ;;  %v209_v4 = vld [vmem:[%s280_s0 + $0x8] sm:$0xff]   ;;  %v210_v5 = vld [vmem:[%s280_s0 + $0x18] sm:$0xff]  }
   0x3   :  { %187 = vmatpush3.bf16.msra.mxu0 %v205_v0  ;;  %200 = vmatpush3.bf16.msra.mxu1 %v205_v0 }
   0x4   :  { %188 = vmatprep.subr.bf16.mxu0 %v206_v1  ;;  %199 = vmatprep.subr.bf16.mxu1 %v206_v1 }
   0x5   :  { %190 = vmatprep.mubr.msk.bf16.mxu0 %vm67_vm0, %v207_v2  ;;  %194 = vmatprep.mubr.msk.bf16.mxu1 %vm67_vm0, %v208_v3 }
   0x6   :  { %8 = vsyncpa [#allocation3], 0  ;;  %v169_v6 = vld [vmem:[%s282_s2] ss:$0 sm:$0xff]  ;;  %s233_s0 = smov [#allocation2]  }
   0x7   :  { %189 = vmatpush3.bf16.msra.mxu0 %v206_v1  ;;  %201 = vmatpush3.bf16.msra.mxu1 %v206_v1  ;;  %s158_s25 = sshll.u32 %s233_s0, 4  ;;  %s159_s25 = int_to_ptr.vmem [resolvable:$true] %s158_s25 }
   0x8   :  { %s211_s2 = scalar_lea.vmem %s159_s25, 1024  ;;  %p216_p1 = scmp.lt.s32.totalorder %s159_s25, %s159_s25 }
   0x9   :  { %p212_p0 = scmp.ne.s32.totalorder %s159_s25, %s211_s2  ;;  %p217_p2 = scmp.lt.s32.totalorder %s211_s2, %s211_s2 }
   0xa   :  { %191 = vmatmul.mubr.msk.bf16.vlgmr.msra.gmra.mxu0 %vm67_vm0, %v209_v4  ;;  %195 = vmatmul.mubr.msk.bf16.vlgmr.msra.gmra.mxu1 %vm67_vm0, %v210_v5 }
   0xb   :  { %p218_p3 = por %p217_p2, %p216_p1 }
   0xd   :  { %p219_p4 = pnand %p218_p3, %p212_p0 }
  0xca   :  { %v192_v7 = vpop.f32.mrf.mxu0  ;;  %v196_v8 = vpop.f32.mrf.mxu1 }
  0xcb   :  { %v123_v9 = vadd.f32 %v192_v7, %v169_v6  ;;  %v139_v10 = vadd.f32 %v196_v8, %v169_v6 }
  0xcc   :  { %v114_v11 = vpop.f32.mrf.mxu0  ;;  %v130_v12 = vpop.f32.mrf.mxu1 }
  0xcd   :  { %147 = vst [vmem:[#allocation2 + $0x10] sm:$0xff] %v123_v9  ;;  %151 = vst [vmem:[#allocation2 + $0x30] sm:$0xff] %v139_v10  ;;  %v115_v13 = vadd.f32 %v169_v6, %v114_v11  ;;  %v131_v14 = vadd.f32 %v169_v6, %v130_v12 }
  0xce   :  { %v193_v15 = vpop.f32.mrf.mxu0  ;;  %v197_v16 = vpop.f32.mrf.mxu1 }
  0xcf   :  { %145 = vst [vmem:[#allocation2] sm:$0xff] %v115_v13  ;;  %149 = vst [vmem:[#allocation2 + $0x20] sm:$0xff] %v131_v14  ;;  %v126_v17 = vadd.f32 %v193_v15, %v169_v6  ;;  %v142_v18 = vadd.f32 %v197_v16, %v169_v6 }
  0xd0   :  { %v117_v19 = vpop.f32.mrf.mxu0  ;;  %v133_v20 = vpop.f32.mrf.mxu1 }
  0xd1   :  { %148 = vst [vmem:[#allocation2 + $0x18] sm:$0xff] %v126_v17  ;;  %152 = vst [vmem:[#allocation2 + $0x38] sm:$0xff] %v142_v18  ;;  %v118_v21 = vadd.f32 %v169_v6, %v117_v19  ;;  %v134_v22 = vadd.f32 %v169_v6, %v133_v20 }
  0xd3   :  { %146 = vst [vmem:[#allocation2 + $0x8] sm:$0xff] %v118_v21  ;;  %150 = vst [vmem:[#allocation2 + $0x28] sm:$0xff] %v134_v22 }
  0xd4   :  { %222 = shalt.err (!%p219_p4)
}
  0xd5   :  { %s234_s26 = smov 128   ;;  %s235_s27 = smov 8  }
  0xd6   :  { %164 = dma.vmem_to_hbm [thread:$0]  %s159_s25, 1024, %s283_s3, [#allocation3], %s234_s26, %s234_s26, %s235_s27  }
  0xd7   :  { %231 = dma.done.wait [#allocation3], 1024  }
  0xd8   :  { %232 = vsyncadd [#allocation3], 4294966272 }
  0xd9   :  { %168 = vsyncpa [#allocation3], 1 }

</bundles_post_ra>
